<compile_context>
chip_gen: v7x
topology: tpu7x:2x2x1
jax: 0.10.0
libtpu: 0.0.40
codegen_flags: <defaults>
</compile_context>

<pallas_src>
import jax
import jax.numpy as jnp
from jax.experimental import pallas as pl
from jax.experimental.pallas import tpu as pltpu


def _attention_pool_kernel(x_ref, w_ref, b_ref, o_ref):
    """Fused AttentionLayer forward for one batch tile.

    x_ref: (tb, S, D)  input tile (native dtype, streamed from HBM exactly once)
    w_ref: (1, D)      nn.Linear(d_model, 1).weight (float32)
    b_ref: (1, 1)      nn.Linear(d_model, 1).bias   (float32)
    o_ref: (tb, 1, D)  pooled output tile
    """
    x = x_ref[...]                                   # keep native dtype, no full-tile upcast
    tb, S, D = x.shape

    # ---- scoring head Linear(D, 1): batched MXU matvec with f32 accumulation.
    # (tb, 1, D) x (tb, S, D) -> (tb, 1, S): sequence lands on the 128-lane axis.
    w = jnp.broadcast_to(w_ref[...].astype(x.dtype).reshape(1, 1, D), (tb, 1, D))
    scores = jnp.einsum(
        "bqd,bsd->bqs", w, x, preferred_element_type=jnp.float32
    ) + b_ref[...].reshape(1, 1, 1)                  # (tb, 1, S)

    # ---- tanh + numerically stable softmax over the sequence (lane) axis.
    t = jnp.tanh(scores)                             # EUP
    m = jnp.max(t, axis=-1, keepdims=True)           # (tb, 1, 1)
    e = jnp.exp(t - m)                               # EUP
    denom = jnp.sum(e, axis=-1, keepdims=True)       # (tb, 1, 1)
    p = e * pl.reciprocal(denom, approx=True)        # softmax weights (tb, 1, S)

    # ---- weighted sum over the sequence on the MXU: (tb,1,S) @ (tb,S,D) -> (tb,1,D).
    out = jnp.einsum(
        "bqs,bsd->bqd", p.astype(x.dtype), x, preferred_element_type=jnp.float32
    )
    o_ref[...] = out.astype(o_ref.dtype)


def _vmem_capacity_bytes():
    """Per-core VMEM capacity; conservative fallback if the query is unavailable."""
    try:
        return int(pltpu.get_tpu_info().vmem_capacity_bytes)
    except Exception:
        return 64 << 20       # v7x per-TensorCore VMEM (smallest current generation)


def _per_row_vmem_bytes(seq, d_model, x_itemsize):
    """Approximate VMEM bytes per batch row inside one grid step (incl. padding)."""
    s8 = -(-seq // 8) * 8                 # sublane-padded sequence
    s_pad = -(-seq // 128) * 128          # lane-padded sequence (temporaries)
    d_pad = -(-d_model // 128) * 128      # lane-padded feature dim
    return (
        2 * s8 * d_pad * x_itemsize       # x tile, double-buffered by the pipeline
        + 2 * 8 * d_pad * x_itemsize      # (tb,1,D) output tile, double-buffered
        + 4 * 8 * s_pad * 4               # live f32 (tb,1,S) score/softmax temporaries
        + 8 * d_pad * (4 + x_itemsize)    # f32 matmul accumulator + broadcast weight
    )


def _pick_batch_block(batch, seq, d_model, x_itemsize):
    """Largest batch tile fitting ~half of VMEM, with >=2 grid steps when possible."""
    budget = max(8 << 20, _vmem_capacity_bytes() // 2)
    tb = max(1, budget // _per_row_vmem_bytes(seq, d_model, x_itemsize))
    if batch > 1:
        # Keep at least 2 grid steps so both v7x TensorCores get a share of the
        # "parallel" batch axis and the DMA pipeline has something to overlap.
        tb = min(tb, pl.cdiv(batch, 2))
    return int(min(tb, batch))


def attention_layer(x, weight, bias, *, batch_block=None):
    """Pallas implementation of AttentionLayer.forward.

    x:      (B, S, D)
    weight: (1, D) or (D,)   -- torch nn.Linear(d_model, 1).weight
    bias:   (1,) or scalar   -- torch nn.Linear(d_model, 1).bias
    returns (B, D)
    """
    B, S, D = x.shape
    x_item = jnp.dtype(x.dtype).itemsize
    tb = int(batch_block) if batch_block is not None else _pick_batch_block(B, S, D, x_item)
    tb = max(1, min(tb, B))

    w2d = jnp.asarray(weight, dtype=jnp.float32).reshape(1, D)
    b2d = jnp.asarray(bias, dtype=jnp.float32).reshape(1, 1)

    # Scoped-VMEM limit: real working set + headroom, capped below physical capacity.
    footprint = tb * _per_row_vmem_bytes(S, D, x_item)
    vmem_cap = _vmem_capacity_bytes()
    vmem_limit = int(min(vmem_cap - (4 << 20), max(32 << 20, footprint + (8 << 20))))

    out = pl.pallas_call(
        _attention_pool_kernel,
        out_shape=jax.ShapeDtypeStruct((B, 1, D), x.dtype),
        grid=(pl.cdiv(B, tb),),                               # partial last tile -> masked writes
        in_specs=[
            pl.BlockSpec((tb, S, D), lambda i: (i, 0, 0)),    # x: streamed from HBM once
            pl.BlockSpec((1, D), lambda i: (0, 0)),           # weight: resident every step
            pl.BlockSpec((1, 1), lambda i: (0, 0)),           # bias: resident every step
        ],
        out_specs=pl.BlockSpec((tb, 1, D), lambda i: (i, 0, 0)),
        compiler_params=pltpu.CompilerParams(
            dimension_semantics=("parallel",),                # batch tiles are independent
            vmem_limit_bytes=vmem_limit,
        ),
    )(x, w2d, b2d)
    # Note: for production shapes keep D a multiple of 128 so the (tb, 1, D) output
    # stores stay lane-dense (unmasked vst); the D=32 demo necessarily masks stores.
    return out.reshape(B, D)


if __name__ == "__main__":
    key = jax.random.PRNGKey(0)
    kx, kw, kb = jax.random.split(key, 3)
    B, S, D = 2, 8, 32                       # batch=2, seq=8, d_model=32
    x = jax.random.normal(kx, (B, S, D), dtype=jnp.float32)
    weight = 0.1 * jax.random.normal(kw, (1, D), dtype=jnp.float32)
    bias = 0.1 * jax.random.normal(kb, (1,), dtype=jnp.float32)

    out = jax.block_until_ready(attention_layer(x, weight, bias))
    assert out.shape == (B, D) and out.dtype == x.dtype

    # Pure-JAX reference mirroring the PyTorch forward.
    lin = jnp.einsum("bsd,od->bso", x, weight,
                     precision=jax.lax.Precision.HIGHEST) + bias     # fc(x)        (B, S, 1)
    p_ref = jax.nn.softmax(jnp.tanh(lin)[..., 0], axis=1)            # softmax(tanh) (B, S)
    ref = jnp.sum(x * p_ref[..., None], axis=1)                      # weighted sum  (B, D)

    err = float(jnp.max(jnp.abs(out - ref)))
    # Tolerance relaxed vs. exact f32: the kernel uses the EUP approximate reciprocal
    # for the softmax normalization and MXU default-precision f32 matmuls.
    assert jnp.allclose(out, ref, atol=5e-3, rtol=5e-3), err
    print("KERNEL_OK")
</pallas_src>

<mosaic_0001>
module attributes {stable_mosaic.version = 11 : i64} {
  func.func @_attention_pool_kernel(%arg0: i32, %arg1: memref<1x8x32xf32, #tpu.memory_space<vmem>>, %arg2: memref<1x32xf32, #tpu.memory_space<vmem>>, %arg3: memref<1x1xf32, #tpu.memory_space<vmem>>, %arg4: memref<1x1x32xf32, #tpu.memory_space<vmem>>) attributes {dimension_semantics = [#tpu.dimension_semantics<parallel>], iteration_bounds = array<i64: 2>, scalar_prefetch = 0 : i64, scratch_operands = 0 : i64, tpu.core_type = #tpu.core_type<tc>, window_params = [{transform_indices = @transform_0, window_bounds = array<i64: 1, 8, 32>}, {pipeline_mode = #tpu.pipeline_mode<synchronous>, transform_indices = @transform_1, window_bounds = array<i64: 1, 32>}, {pipeline_mode = #tpu.pipeline_mode<synchronous>, transform_indices = @transform_2, window_bounds = array<i64: 1, 1>}, {transform_indices = @transform_3, window_bounds = array<i64: 1, 1, 32>}]} {
    %c0 = arith.constant 0 : index
    %c0_0 = arith.constant 0 : index
    %c0_1 = arith.constant 0 : index
    %0 = vector.load %arg1[%c0, %c0_0, %c0_1] : memref<1x8x32xf32, #tpu.memory_space<vmem>>, vector<1x8x32xf32>
    %c0_2 = arith.constant 0 : index
    %c0_3 = arith.constant 0 : index
    %1 = vector.load %arg2[%c0_2, %c0_3] : memref<1x32xf32, #tpu.memory_space<vmem>>, vector<1x32xf32>
    %2 = vector.shape_cast %1 : vector<1x32xf32> to vector<1x1x32xf32>
    "tpu.trace_start"() <{level = 10 : i32, message = "bqd,bsd->bqs"}> : () -> ()
    %cst = arith.constant dense<0.000000e+00> : vector<1x1x8xf32>
    %3 = tpu.matmul %2, %0, %cst {dimension_numbers = #tpu.dot_dimension_numbers<[2], [2], [1], [1], [0, 0, 0, 1, 1, 1], [0], [0]>} : vector<1x1x32xf32>, vector<1x8x32xf32>, vector<1x1x8xf32> -> vector<1x1x8xf32>
    "tpu.trace_stop"() : () -> ()
    %c0_4 = arith.constant 0 : index
    %c0_5 = arith.constant 0 : index
    %4 = vector.load %arg3[%c0_4, %c0_5] : memref<1x1xf32, #tpu.memory_space<vmem>>, vector<1x1xf32>
    %5 = vector.shape_cast %4 : vector<1x1xf32> to vector<1x1x1xf32>
    %6 = vector.broadcast %5 : vector<1x1x1xf32> to vector<1x1x8xf32>
    %7 = arith.addf %3, %6 : vector<1x1x8xf32>
    %8 = math.tanh %7 : vector<1x1x8xf32>
    %cst_6 = arith.constant dense<0xFF800000> : vector<1x1xf32>
    %9 = vector.multi_reduction <maximumf>, %8, %cst_6 [2] : vector<1x1x8xf32> to vector<1x1xf32>
    %10 = vector.shape_cast %9 : vector<1x1xf32> to vector<1x1x1xf32>
    %11 = vector.broadcast %10 : vector<1x1x1xf32> to vector<1x1x8xf32>
    %12 = arith.subf %8, %11 : vector<1x1x8xf32>
    %13 = math.exp %12 : vector<1x1x8xf32>
    %cst_7 = arith.constant dense<0.000000e+00> : vector<1x1xf32>
    %14 = vector.multi_reduction <add>, %13, %cst_7 [2] : vector<1x1x8xf32> to vector<1x1xf32>
    %15 = vector.shape_cast %14 : vector<1x1xf32> to vector<1x1x1xf32>
    %16 = tpu.reciprocal %15 {approx = true} : vector<1x1x1xf32> -> vector<1x1x1xf32>
    %17 = vector.broadcast %16 : vector<1x1x1xf32> to vector<1x1x8xf32>
    %18 = arith.mulf %13, %17 : vector<1x1x8xf32>
    "tpu.trace_start"() <{level = 10 : i32, message = "bqs,bsd->bqd"}> : () -> ()
    %cst_8 = arith.constant dense<0.000000e+00> : vector<1x1x32xf32>
    %19 = tpu.matmul %18, %0, %cst_8 {dimension_numbers = #tpu.dot_dimension_numbers<[2], [1], [1], [2], [0, 0, 0, 1, 1, 2], [0], [0]>} : vector<1x1x8xf32>, vector<1x8x32xf32>, vector<1x1x32xf32> -> vector<1x1x32xf32>
    "tpu.trace_stop"() : () -> ()
    %c0_9 = arith.constant 0 : index
    %c0_10 = arith.constant 0 : index
    %c0_11 = arith.constant 0 : index
    %20 = vector.load %arg4[%c0_9, %c0_10, %c0_11] : memref<1x1x32xf32, #tpu.memory_space<vmem>>, vector<1x1x32xf32>
    tpu.vector_store %arg4[%c0_9, %c0_10, %c0_11], %19 {strides = array<i32>} : memref<1x1x32xf32, #tpu.memory_space<vmem>>, vector<1x1x32xf32>,
    return
  }
  func.func @transform_0(%arg0: i32) -> (i32, i32, i32) {
    %c0_i32 = arith.constant 0 : i32
    %c0_i32_0 = arith.constant 0 : i32
    %c0_i32_1 = arith.constant 0 : i32
    return %arg0, %c0_i32, %c0_i32_0 : i32, i32, i32
  }
  func.func @transform_1(%arg0: i32) -> (i32, i32) {
    %c0_i32 = arith.constant 0 : i32
    %c0_i32_0 = arith.constant 0 : i32
    %c0_i32_1 = arith.constant 0 : i32
    return %c0_i32, %c0_i32_0 : i32, i32
  }
  func.func @transform_2(%arg0: i32) -> (i32, i32) {
    %c0_i32 = arith.constant 0 : i32
    %c0_i32_0 = arith.constant 0 : i32
    %c0_i32_1 = arith.constant 0 : i32
    return %c0_i32, %c0_i32_0 : i32, i32
  }
  func.func @transform_3(%arg0: i32) -> (i32, i32, i32) {
    %c0_i32 = arith.constant 0 : i32
    %c0_i32_0 = arith.constant 0 : i32
    %c0_i32_1 = arith.constant 0 : i32
    return %arg0, %c0_i32, %c0_i32_0 : i32, i32, i32
  }
}

</mosaic_0001>

<bundles_post_ra>
// kernel: tpu_custom_call.1
= control target key start
LH: loop header
LB: loop body
LE: loop exit
PB: predicated region body
PF: predicated region fallthrough
CT: control target
= control target key end

     0   :  { %s818_s0 = inlined_call_operand.hbm [shape: f32[2,8,32], index: 0, kind: input, shape index: {}]   ;;  %s819_s1 = inlined_call_operand.vmem [shape: f32[1,32], index: 1, kind: input, shape index: {}]   ;;  %s820_s2 = inlined_call_operand.<no memory space> [shape: f32[1,1], index: 2, kind: input, shape index: {}]   ;;  %s821_s3 = inlined_call_operand.hbm [shape: f32[2,1,32], index: 3, kind: output, shape index: {}]  }
   0x1   :  { %v8_v0 = vstv %s820_s2 }
   0x2   :  { %9 = vst [vmem:[#allocation2] sm:$0x1] %v8_v0 }
   0x3   :  { %10 = vsyncpa [#allocation4], 0 }
   0x4   :  { %12 = vsyncpa [#allocation4 + $0x1], 0 }
   0x5   :  { %13 = vsyncpa [#allocation5], 0 }
   0x6   :  { %15 = vsyncpa [#allocation5 + $0x1], 0  ;;  %s653_s14 = smov 0   ;;  %s655_s15 = smov 0  }
   0x7   :  { %s657_s16 = smov 0   ;;  %s659_s17 = smov 0  }
   0x8 LB: > { %s674_s2 = sadd.s32 4294967295, %s623_s17   ;;  %s444_s18 = sadd.s32 4294967294, %s623_s17   ;;  %s623_s17 = sphi %s659_s17, %s836_s17   ;;  %s619_s16 = sphi %s657_s16, %s835_s16   ;;  %s615_s15 = sphi %s655_s15, %s834_s15   ;;  %s611_s14 = sphi %s653_s14, %s833_s14  }
   0x9   : > { %s678_s19 = sadd.s32 1, %s623_s17   ;;  %s28_s20 = sadd.s32 1, %s619_s16 }
   0xa   : > { %s25_s21 = ssub.s32 %s623_s17, %s678_s19  ;;  %p35_p0 = scmp.ne.s32.totalorder %s619_s16, %s615_s15 }
   0xb   : > { %p26_p1 = scmp.eq.s32.totalorder %s25_s21, 0  ;;  %p36_p2 = scmp.eq.s32.totalorder %s623_s17, 0 }
   0xc   : > { %p41_p3 = scmp.ne.s32.totalorder %s615_s15, %s611_s14  ;;  %p42_p4 = scmp.eq.s32.totalorder %s674_s2, 0 }
   0xd   : > { %s690_s22 = scalar_select %p26_p1, %s619_s16, %s28_s20  }
   0xe   : > { %p692_p5 = por %p36_p2, %p35_p0  ;;  %p696_p6 = por %p42_p4, %p41_p3 }
   0xf   : > { %p107_p7 = scmp.eq.s32.totalorder %s674_s2, 1  ;;  %p113_p8 = scmp.eq.s32.totalorder %s444_s18, 1 }
  0x10   : > { %p483_p10 = scmp.lt.s32.totalorder %s623_s17, 2  ;;  %s139_s27 = sand.u32 1, %s619_s16  }
  0x11   : > { %p703_p11 = por %p107_p7, %p35_p0  ;;  %p707_p12 = por %p113_p8, %p41_p3 }
  0x12   : > { %s448_s28 = sshll.u32 %s623_s17, 7  ;;  %s447_s29 = sshll.u32 %s139_s27, 3 }
  0x13   : > { %s825_s25 = scalar_select %p703_p11, 1, 0 }
  0x14   : > { %s826_s26 = scalar_select %p707_p12, 1, 0 }
  0x15   : > { %s716_s5 = scalar_lea.hbm %s818_s0, %s448_s28  ;;  %s143_s6 = scalar_lea.vmem [#allocation3], %s447_s29 }
  0x16   : > { %s150_s7 = sshll.u32 %s143_s6, 4  ;;  %p720_p13 = pnand %p483_p10, %p692_p5  ;;  %s724_s7 = int_to_ptr.vmem [resolvable:$true] %s150_s7 }
  0x17   : > { %s140_s9 = scalar_lea.sflag [#allocation4], %s139_s27  ;;  %s527_s10 = scalar_lea.hbm %s716_s5, 128 }
  0x18   : > { %p528_p2 = scmp.ne.s32.totalorder %s716_s5, %s527_s10  ;;  %p529_p3 = pneg %p720_p13 }
  0x19   : > { %s532_s13 = scalar_lea.hbm %s818_s0, 256  ;;  %p533_p5 = scmp.lt.u32.totalorder %s716_s5, %s818_s0 }
  0x1a   : > { %p530_p4 = pnand %p529_p3, %p528_p2  ;;  %p534_p8 = scmp.lt.u32.totalorder %s532_s13, %s527_s10 }
  0x1b   : > { %p536_p9 = scmp.lt.u32.totalorder %s527_s10, %s716_s5 }
  0x1c   : > { %p531_p7 = pneg %p530_p4  ;;  %p535_p10 = por %p534_p8, %p533_p5 }
  0x1e   : > { %p537_p0 = por %p536_p9, %p535_p10 }
  0x20   : > { %p538_p1 = pnand %p537_p0, %p531_p7 }
  0x22   : > { %541 = shalt.err (!%p538_p1)
}
  0x23   : > { %s542_s21 = scalar_lea.vmem %s724_s7, 128  ;;  %s625_s23 = smov [#allocation3]  }
  0x24   : > { %p543_p2 = scmp.ne.s32.totalorder %s724_s7, %s542_s21  ;;  %s547_s27 = sshll.u32 %s625_s23, 4  ;;  %s548_s27 = int_to_ptr.vmem [resolvable:$false] %s547_s27 }
  0x25   : > { %s549_s28 = scalar_lea.vmem %s548_s27, 256  ;;  %p550_p11 = scmp.lt.s32.totalorder %s724_s7, %s548_s27 }
  0x26   : > { %p545_p4 = pnand %p543_p2, %p529_p3  ;;  %p551_p5 = scmp.lt.s32.totalorder %s549_s28, %s542_s21 }
  0x28   : > { %p546_p12 = pneg %p545_p4  ;;  %p552_p8 = por %p551_p5, %p550_p11 }
  0x2a   : > { %p553_p9 = pnand %p552_p8, %p546_p12 }
  0x2c   : > { %556 = shalt.err (!%p553_p9)
}
  0x2d   : > { %478 = dma.hbm_to_vmem [thread:$0]  (!%p720_p13), %s716_s5, 128, %s724_s7, %s140_s9  }
  0x2e   : > { %p828_p0 = scmp.lt.s32.totalorder %s623_s17, 3  ;;  %p829_p1 = scmp.ge.s32.totalorder %s623_s17, 1 }
  0x30   : > { %p156_p3 = pnand %p829_p1, %p828_p0 }
  0x31   : > { %s758_s29 = sand.u32 (!%p156_p3), 1, %s615_s15  }
  0x32   : > { %159 = sbr.rel (%p156_p3) target bundleno = 829 (0x33d), region = 32  ;;  %s450_s30 = sshll.u32 (!%p156_p3), %s758_s29, 3 }
  0x33   : > { %s162_s4 = scalar_lea.sflag (!%p156_p3), [#allocation4], %s758_s29  ;;  %s165_s6 = scalar_lea.vmem (!%p156_p3), [#allocation3], %s450_s30 }
  0x39   : > { %602 = dma.done.wait (%p696_p6), %s162_s4, 128  }
  0x3a   : > { %604 = vsyncadd (%p696_p6), %s162_s4, 4294967168  ;;  %v626_v1 = vmov 0.0   ;;  %vm627_vm0 = vmmov 0   ;;  %v628_v2 = vmov 0   ;;  %vm199_vm1 = vcmask 261120   ;;  %v187_v3 = vld [vmem:[%s165_s6] sm:$0xff] }
  0x3b   : > { %461 = vmatprep.subr.mxu0 %v626_v1  ;;  %463 = vmatprep.mubr.msk.f32.mxu0 %vm627_vm0, %v626_v1  ;;  %v189_v4 = vld [vmem:[#allocation2] sm:$0x1]  ;;  %v195_v6 = vlaneseq  ;;  %vm277_vm2 = vcmask 57344   ;;  %vm289_vm3 = vcmask 64512   ;;  %s454_s24 = sshll.u32 %s674_s2, 4  ;;  %s186_s8 = scalar_lea.vmem [#allocation6], %s758_s29 }
  0x3c   : > { %520 = vset.pattern.permute.xlu0 %v628_v2  ;;  %466 = vmatprep.subr.mxu1 %v626_v1  ;;  %v188_v5 = vld [vmem:[%s819_s1] sm:$0x1]  ;;  %s378_s9 = sshll.u32 %s186_s8, 4  ;;  %vm363_vm4 = vcmask 253952   ;;  %s774_s12 = scalar_lea.hbm %s821_s3, %s454_s24  ;;  %s776_s9 = int_to_ptr.vmem [resolvable:$true] %s378_s9 }
  0x3d   : > { %468 = vmatprep.mubr.msk.f32.mxu1 %vm627_vm0, %v626_v1  ;;  %462 = vmatpush3.xpose.msk.msra.mxu0 %vm199_vm1, %v187_v3  ;;  %v196_v7 = vshrl.u32 %v195_v6, 7  ;;  %s366_s13 = scalar_lea.sflag [#allocation5], %s758_s29  ;;  %s557_s18 = scalar_lea.vmem %s776_s9, 16 }
  0x3e   : > { %192 = vperm.xlu0 %520, %v189_v4   ;;  %467 = vmatpush3.msra.mxu1 %v187_v3  ;;  %p558_p6 = scmp.ne.s32.totalorder %s776_s9, %s557_s18  ;;  %p830_p11 = scmp.ne.s32.totalorder %s825_s25, 0 }
  0x3f   : > { %v197_v8 = vsub.s32 0, %v196_v7  ;;  %s629_s2 = smov [#allocation6]  }
  0x40   : > { %464 = vmatmul.mubr.msk.f32.vlgmr.msra.gmra.mrb[0].mxu0 %vm199_vm1, %v188_v5  ;;  %p559_p12 = pnand %p558_p6, %p830_p11  ;;  %s561_s20 = sshll.u32 %s629_s2, 4  ;;  %s562_s20 = int_to_ptr.vmem [resolvable:$false] %s561_s20 }
  0x41   : > { %s563_s21 = scalar_lea.vmem %s562_s20, 32  ;;  %p564_p7 = scmp.lt.s32.totalorder %s776_s9, %s562_s20 }
  0x42   : > { %p560_p13 = pneg %p559_p12  ;;  %p565_p10 = scmp.lt.s32.totalorder %s563_s21, %s557_s18 }
  0x44   : > { %p566_p2 = por %p565_p10, %p564_p7 }
  0x46   : > { %p567_p4 = pnand %p566_p2, %p560_p13 }
  0xbd   : > { %v193_v9 = vpop.permute.xlu0 %192 }
  0xbe   : > { %v198_v10 = vrot.slane %v193_v9, %v197_v8 }
 0x113   : > { %v272_v11 = vpop.f32.mrb[0].mxu0 }
 0x114   : > { %v273_v12 = vadd.f32 %v272_v11, %v198_v10  ;;  %v465_v13 = vpop.f32.mrb[1].mxu0 }
 0x116   : > { %521 = vtanh.f32 %v273_v12 }
 0x120   : > { %v522_v14 = vpop.eup %521 }
 0x121   : > { %v278_v15 = vsel %vm277_vm2, %v522_v14, -inf }
 0x122   : > { %279 = vmax.xlane.f32.xlu0 %v278_v15 }
 0x1af   : > { %v280_v16 = vpop.xlane.xlu0 %279 }
 0x1b0   : > { %v281_v17 = vsub.f32 %v522_v14, %v280_v16 }
 0x1b2   : > { %v282_v18 = vmul.f32 1.442695, %v281_v17 }
 0x1b4   : > { %523 = vpow2.f32 %v282_v18 }
 0x1be   : > { %v524_v19 = vpop.eup %523 }
 0x1bf   : > { %v284_v20 = vsel %vm277_vm2, %v524_v19, 0.0 }
 0x1c0   : > { %285 = vadd.xlane.f32.xlu1 %v284_v20 }
 0x24d   : > { %v286_v21 = vpop.xlane.xlu1 %285 }
 0x24e   : > { %525 = vrcp.f32 %v286_v21 }
 0x258   : > { %v526_v22 = vpop.eup %525 }
 0x259   : > { %v288_v23 = vmul.f32 %v526_v22, %v524_v19 }
 0x25b   : > { %469 = vmatmul.mubr.msk.f32.vlgmr.msra.gmra.mrb[0].mxu1 %vm289_vm3, %v288_v23 }
 0x32e   : > { %v359_v24 = vpop.f32.mrb[0].mxu1 }
 0x32f   : > { %364 = vst.msk [vmem:[%s186_s8] sm:$0x1] %vm363_vm4, %v359_v24  ;;  %v470_v25 = vpop.f32.mrb[1].mxu1 }
 0x330   : > { %570 = shalt.err (!%p567_p4)
}
 0x331   : > { %s571_s23 = scalar_lea.hbm %s774_s12, 16  ;;  %s575_s29 = scalar_lea.hbm %s821_s3, 32 }
 0x332   : > { %p572_p5 = scmp.ne.s32.totalorder %s774_s12, %s571_s23  ;;  %p576_p0 = scmp.lt.u32.totalorder %s774_s12, %s821_s3 }
 0x333   : > { %p577_p1 = scmp.lt.u32.totalorder %s575_s29, %s571_s23  ;;  %p579_p6 = scmp.lt.u32.totalorder %s571_s23, %s774_s12 }
 0x334   : > { %p573_p8 = pnand %p572_p5, %p830_p11 }
 0x335   : > { %p578_p3 = por %p577_p1, %p576_p0 }
 0x336   : > { %p574_p9 = pneg %p573_p8 }
 0x337   : > { %p580_p12 = por %p579_p6, %p578_p3 }
 0x339   : > { %p581_p13 = pnand %p580_p12, %p574_p9 }
 0x33b   : > { %584 = shalt.err (!%p581_p13)
}
 0x33c   : > { %473 = dma.vmem_to_hbm [thread:$0]  (%p830_p11), %s776_s9, 16, %s774_s12, %s366_s13  }
 0x33d PF: > { %s390_s6 = sand.u32 1, %s611_s14   ;;  %p831_p7 = scmp.ne.s32.totalorder %s826_s26, 0 }
 0x33e   : > { %p832_p10 = scmp.ge.s32.totalorder %s623_s17, 2  ;;  %s391_s5 = scalar_lea.sflag [#allocation5], %s390_s6 }
 0x340   : > { %p480_p2 = pnand %p832_p10, %p831_p7 }
 0x342   : > { %606 = dma.done.wait (!%p480_p2), %s391_s5, 16  }
 0x343   : > { %608 = vsyncadd (!%p480_p2), %s391_s5, 4294967280  ;;  %p18_p4 = scmp.ge.s32.totalorder %s678_s19, 4   ;;  %s833_s14 = smov %s615_s15 }
 0x344   : > { %s834_s15 = smov %s619_s16  ;;  %s835_s16 = smov %s690_s22 }
 0x345   : > { %s836_s17 = smov %s678_s19  ;;  %20 = sbr.rel (!%p18_p4) target bundleno = 8 (0x8), region = 77 }
 0x34c   :  { %395 = vsyncpa [#allocation4], 1 }
 0x34d   :  { %397 = vsyncpa [#allocation4 + $0x1], 1 }
 0x34e   :  { %398 = vsyncpa [#allocation5], 1 }
 0x34f   :  { %400 = vsyncpa [#allocation5 + $0x1], 1 }

</bundles_post_ra>
